<compile_context>
chip_gen: v7x
topology: tpu7x:2x2x1
jax: 0.10.0
libtpu: 0.0.40
codegen_flags: <defaults>
</compile_context>

<pallas_src>
import jax
import jax.numpy as jnp
from jax.experimental import pallas as pl
from jax.experimental.pallas import tpu as pltpu


FEATS = 110     # fixed by nn.Linear(110, 110) in the module
TN_MAX = 4096   # max node-axis tile (multiple of 128); ~7 MiB double-buffered


def _round_up(x, m):
    return ((x + m - 1) // m) * m


def _reggnn3_kernel(x_ref, w_ref, b_ref, o_ref):
    # out = W @ x + b  (feature axis = sublanes, node axis = lanes).
    acc = jnp.dot(w_ref[...], x_ref[...],
                  preferred_element_type=jnp.float32)      # MXU, f32 accumulate
    o_ref[...] = (acc + b_ref[...]).astype(o_ref.dtype)    # VPU bias add + cast


def reggnn3_forward(x, edge_index, w, b):
    """Forward of RegGNN3. x: (110, N); edge_index is ignored (as in the module).

    Returns (110, N) = W @ x + b[:, None].
    """
    del edge_index  # unused by the PyTorch forward (conv1 is never applied)
    C, N = x.shape
    assert C == FEATS, f"expected {FEATS} features, got {C}"

    # Parameters are tiny (~48 KiB); cast to the activation dtype so bf16 I/O
    # from the surrounding model "just works" (accumulation stays f32).
    w_c = w.astype(x.dtype)
    b_c = b.astype(x.dtype).reshape(FEATS, 1)

    # Node-axis tiling:
    #  * N <= 128: a single block whose dims equal the full array dims (legal
    #    regardless of alignment) -- this regime is launch-bound anyway.
    #  * N  > 128: lane-aligned tiles (multiple of 128), capped at TN_MAX and
    #    at ~N/2 so the grid always has >= 2 steps (v7x megacore split).
    if N <= 128:
        tn = N
    else:
        tn = min(TN_MAX, _round_up((N + 1) // 2, 128))
    grid = (pl.cdiv(N, tn),)

    itemsize = jnp.dtype(x.dtype).itemsize
    cost = pl.CostEstimate(
        flops=2 * FEATS * FEATS * N,
        transcendentals=0,
        bytes_accessed=itemsize * (2 * FEATS * N + FEATS * FEATS + FEATS),
    )

    return pl.pallas_call(
        _reggnn3_kernel,
        out_shape=jax.ShapeDtypeStruct((FEATS, N), x.dtype),
        grid=grid,
        in_specs=[
            pl.BlockSpec((FEATS, tn), lambda i: (0, i)),      # x node tile
            pl.BlockSpec((FEATS, FEATS), lambda i: (0, 0)),   # W   (VMEM-resident)
            pl.BlockSpec((FEATS, 1), lambda i: (0, 0)),       # b   (VMEM-resident)
        ],
        out_specs=pl.BlockSpec((FEATS, tn), lambda i: (0, i)),
        compiler_params=pltpu.CompilerParams(
            dimension_semantics=("parallel",),
        ),
        cost_estimate=cost,
    )(x, w_c, b_c)


if __name__ == "__main__":
    key = jax.random.PRNGKey(0)
    k_x, k_w, k_b, k_x2 = jax.random.split(key, 4)

    # Deterministic synthetic parameters (shapes from nn.Linear(110, 110)).
    bound = 1.0 / jnp.sqrt(jnp.float32(FEATS))
    w = jax.random.uniform(k_w, (FEATS, FEATS), jnp.float32, -bound, bound)
    b = jax.random.uniform(k_b, (FEATS,), jnp.float32, -bound, bound)

    fwd = jax.jit(reggnn3_forward)

    # Small node count in the PyTorch layout (110, N); edge_index unused.
    N1 = 8
    x1 = jax.random.normal(k_x, (FEATS, N1), jnp.float32)
    edge_index = jnp.zeros((2, 16), jnp.int32)
    out1 = jax.block_until_ready(fwd(x1, edge_index, w, b))
    ref1 = (x1.T @ w.T + b).T
    assert out1.shape == (FEATS, N1)
    assert jnp.allclose(out1, ref1, atol=1e-5, rtol=1e-5), "mismatch (N=8)"

    # Non-dividing node count: exercises the multi-tile path with a partial
    # (masked) last block and the >=2-grid-step megacore split.
    N2 = 300
    x2 = jax.random.normal(k_x2, (FEATS, N2), jnp.float32)
    out2 = jax.block_until_ready(fwd(x2, edge_index, w, b))
    ref2 = (x2.T @ w.T + b).T
    assert out2.shape == (FEATS, N2)
    assert jnp.allclose(out2, ref2, atol=1e-5, rtol=1e-5), "mismatch (N=300)"

    print("KERNEL_OK")
</pallas_src>

<mosaic_0001>
module attributes {stable_mosaic.version = 11 : i64} {
  func.func @_reggnn3_kernel(%arg0: i32, %arg1: memref<110x8xf32, #tpu.memory_space<vmem>>, %arg2: memref<110x110xf32, #tpu.memory_space<vmem>>, %arg3: memref<110x1xf32, #tpu.memory_space<vmem>>, %arg4: memref<110x8xf32, #tpu.memory_space<vmem>>) attributes {dimension_semantics = [#tpu.dimension_semantics<parallel>], iteration_bounds = array<i64: 1>, scalar_prefetch = 0 : i64, scratch_operands = 0 : i64, tpu.core_type = #tpu.core_type<tc>, window_params = [{transform_indices = @transform_0, window_bounds = array<i64: 110, 8>}, {pipeline_mode = #tpu.pipeline_mode<synchronous>, transform_indices = @transform_1, window_bounds = array<i64: 110, 110>}, {pipeline_mode = #tpu.pipeline_mode<synchronous>, transform_indices = @transform_2, window_bounds = array<i64: 110, 1>}, {transform_indices = @transform_3, window_bounds = array<i64: 110, 8>}]} {
    %c0 = arith.constant 0 : index
    %c0_0 = arith.constant 0 : index
    %0 = vector.load %arg2[%c0, %c0_0] : memref<110x110xf32, #tpu.memory_space<vmem>>, vector<110x110xf32>
    %c0_1 = arith.constant 0 : index
    %c0_2 = arith.constant 0 : index
    %1 = vector.load %arg1[%c0_1, %c0_2] : memref<110x8xf32, #tpu.memory_space<vmem>>, vector<110x8xf32>
    %cst = arith.constant dense<0.000000e+00> : vector<110x8xf32>
    %2 = tpu.matmul %0, %1, %cst {dimension_numbers = #tpu.dot_dimension_numbers<[1], [0], [0], [1], [0, 0, 1, 1], [], []>} : vector<110x110xf32>, vector<110x8xf32>, vector<110x8xf32> -> vector<110x8xf32>
    %c0_3 = arith.constant 0 : index
    %c0_4 = arith.constant 0 : index
    %3 = vector.load %arg3[%c0_3, %c0_4] : memref<110x1xf32, #tpu.memory_space<vmem>>, vector<110x1xf32>
    %4 = vector.broadcast %3 : vector<110x1xf32> to vector<110x8xf32>
    %5 = arith.addf %2, %4 : vector<110x8xf32>
    %c0_5 = arith.constant 0 : index
    %c0_6 = arith.constant 0 : index
    %6 = vector.load %arg4[%c0_5, %c0_6] : memref<110x8xf32, #tpu.memory_space<vmem>>, vector<110x8xf32>
    tpu.vector_store %arg4[%c0_5, %c0_6], %5 {strides = array<i32>} : memref<110x8xf32, #tpu.memory_space<vmem>>, vector<110x8xf32>,
    return
  }
  func.func @transform_0(%arg0: i32) -> (i32, i32) {
    %c0_i32 = arith.constant 0 : i32
    %c0_i32_0 = arith.constant 0 : i32
    return %c0_i32, %arg0 : i32, i32
  }
  func.func @transform_1(%arg0: i32) -> (i32, i32) {
    %c0_i32 = arith.constant 0 : i32
    %c0_i32_0 = arith.constant 0 : i32
    %c0_i32_1 = arith.constant 0 : i32
    return %c0_i32, %c0_i32_0 : i32, i32
  }
  func.func @transform_2(%arg0: i32) -> (i32, i32) {
    %c0_i32 = arith.constant 0 : i32
    %c0_i32_0 = arith.constant 0 : i32
    %c0_i32_1 = arith.constant 0 : i32
    return %c0_i32, %c0_i32_0 : i32, i32
  }
  func.func @transform_3(%arg0: i32) -> (i32, i32) {
    %c0_i32 = arith.constant 0 : i32
    %c0_i32_0 = arith.constant 0 : i32
    return %c0_i32, %arg0 : i32, i32
  }
}

</mosaic_0001>

<bundles_post_ra>
// kernel: reggnn3_forward.1
= control target key start
LH: loop header
LB: loop body
LE: loop exit
PB: predicated region body
PF: predicated region fallthrough
CT: control target
= control target key end

     0   :  { %v468_v3 = vmov 0   ;;  %vm126_vm0 = vcmask 900096   ;;  %vm169_vm1 = vcmask 1045504   ;;  %vm469_vm2 = vmmov 1   ;;  %s685_s0 = inlined_call_operand.vmem [shape: f32[110,8], index: 0, kind: input, shape index: {}]   ;;  %s686_s1 = inlined_call_operand.vmem [shape: f32[110,110], index: 1, kind: input, shape index: {}]   ;;  %s687_s2 = inlined_call_operand.vmem [shape: f32[110,1], index: 2, kind: input, shape index: {}]   ;;  %s688_s3 = inlined_call_operand.vmem [shape: f32[110,8], index: 3, kind: output, shape index: {}]  }
   0x1   :  { %v28_v0 = vld [vmem:[%s685_s0] sm:$0xff]  ;;  %v29_v1 = vld [vmem:[%s685_s0 + $0x8] sm:$0xff]  ;;  %v30_v2 = vld [vmem:[%s685_s0 + $0x10] sm:$0xff]  ;;  %467 = vset.pattern.permute.xlu1 %v468_v3  ;;  %466 = vset.pattern.permute.xlu0 %v468_v3  ;;  %vm308_vm4 = vcmask 64512   ;;  %vm322_vm5 = vcmask 62464  }
   0x2   :  { %v420_v4 = vpack.c.bf16 %v29_v1, %v28_v0  ;;  %v31_v5 = vld [vmem:[%s685_s0 + $0x18] sm:$0xff]  ;;  %v32_v7 = vld [vmem:[%s685_s0 + $0x20] sm:$0xff]  ;;  %v33_v8 = vld [vmem:[%s685_s0 + $0x28] sm:$0xff] }
   0x3   :  { %v424_v6 = vpack.c.bf16 %v31_v5, %v30_v2  ;;  %v428_v9 = vpack.c.bf16 %v33_v8, %v32_v7  ;;  %v14_v10 = vld [vmem:[%s686_s1] sm:$0xff]  ;;  %v34_v12 = vld [vmem:[%s685_s0 + $0x30] sm:$0xff]  ;;  %v35_v13 = vld [vmem:[%s685_s0 + $0x38] sm:$0xff] }
   0x4   :  { %421 = vmatprep.subr.bf16.mxu0 %v420_v4  ;;  %450 = vmatprep.subr.bf16.mxu1 %v420_v4  ;;  %v22_v11 = vld [vmem:[%s686_s1 + $0x40] sm:$0xff]  ;;  %v432_v14 = vpack.c.bf16 %v35_v13, %v34_v12  ;;  %v44_v15 = vld [vmem:[%s687_s2 + $0x10] sm:$0xff]  ;;  %v37_v17 = vld [vmem:[%s685_s0 + $0x48] sm:$0xff] }
   0x5   :  { %423 = vmatpush3.bf16.msra.mxu0 %v420_v4  ;;  %457 = vmatpush3.bf16.msra.mxu1 %v420_v4  ;;  %v36_v16 = vld [vmem:[%s685_s0 + $0x40] sm:$0xff]  ;;  %v45_v19 = vld [vmem:[%s687_s2 + $0x18] sm:$0xff]  ;;  %v43_v20 = vld [vmem:[%s687_s2 + $0x8] sm:$0xff] }
   0x6   :  { %425 = vmatprep.subr.bf16.mxu0 %v424_v6  ;;  %451 = vmatprep.subr.bf16.mxu1 %v424_v6  ;;  %v42_v18 = vld [vmem:[%s687_s2] sm:$0xff]  ;;  %v436_v21 = vpack.c.bf16 %v37_v17, %v36_v16  ;;  %v38_v22 = vld [vmem:[%s685_s0 + $0x50] sm:$0xff]  ;;  %v39_v23 = vld [vmem:[%s685_s0 + $0x58] sm:$0xff] }
   0x7   :  { %399 = vmatprep.mubr.msk.f32.mxu0 %vm126_vm0, %v14_v10  ;;  %411 = vmatprep.mubr.msk.f32.mxu1 %vm126_vm0, %v22_v11  ;;  %v47_v24 = vld [vmem:[%s687_s2 + $0x28] sm:$0xff]  ;;  %v46_v25 = vld [vmem:[%s687_s2 + $0x20] sm:$0xff]  ;;  %v440_v26 = vpack.c.bf16 %v39_v23, %v38_v22  ;;  %v49_v29 = vld [vmem:[%s687_s2 + $0x38] sm:$0xff] }
   0x8   :  { %68 = vperm.xlu1 %467, %v44_v15   ;;  %58 = vperm.xlu0 %466, %v42_v18   ;;  %v40_v27 = vld [vmem:[%s685_s0 + $0x60] sm:$0xff]  ;;  %v41_v28 = vld [vmem:[%s685_s0 + $0x68] sm:$0x3f]  ;;  %v48_v30 = vld [vmem:[%s687_s2 + $0x30] sm:$0xff] }
   0x9   :  { %427 = vmatpush3.bf16.msra.mxu0 %v424_v6  ;;  %458 = vmatpush3.bf16.msra.mxu1 %v424_v6  ;;  %v444_v31 = vpack.c.bf16 %v41_v28, %v40_v27  ;;  %vm445_vm3 = vmpackc.low %vm169_vm1, %vm469_vm2  ;;  %v51_v32 = vld [vmem:[%s687_s2 + $0x48] sm:$0xff]  ;;  %v50_v33 = vld [vmem:[%s687_s2 + $0x40] sm:$0xff] }
   0xa   :  { %429 = vmatprep.subr.bf16.mxu0 %v428_v9  ;;  %452 = vmatprep.subr.bf16.mxu1 %v428_v9  ;;  %v53_v34 = vld [vmem:[%s687_s2 + $0x58] sm:$0xff]  ;;  %v15_v35 = vld [vmem:[%s686_s1 + $0x8] sm:$0xff]  ;;  %v16_v37 = vld [vmem:[%s686_s1 + $0x10] sm:$0xff] }
   0xb   :  { %v23_v36 = vld [vmem:[%s686_s1 + $0x48] sm:$0xff]  ;;  %v24_v38 = vld [vmem:[%s686_s1 + $0x50] sm:$0xff]  ;;  %v17_v41 = vld [vmem:[%s686_s1 + $0x18] sm:$0xff] }
   0xc   :  { %73 = vperm.xlu1 %467, %v45_v19   ;;  %63 = vperm.xlu0 %466, %v43_v20   ;;  %v52_v39 = vld [vmem:[%s687_s2 + $0x50] sm:$0xff]  ;;  %v55_v40 = vld [vmem:[%s687_s2 + $0x68] sm:$0x3f]  ;;  %v25_v42 = vld [vmem:[%s686_s1 + $0x58] sm:$0xff] }
   0xd   :  { %431 = vmatpush3.bf16.msra.mxu0 %v428_v9  ;;  %459 = vmatpush3.bf16.msra.mxu1 %v428_v9  ;;  %v18_v43 = vld [vmem:[%s686_s1 + $0x20] sm:$0xff]  ;;  %v19_v46 = vld [vmem:[%s686_s1 + $0x28] sm:$0xff]  ;;  %v20_v48 = vld [vmem:[%s686_s1 + $0x30] sm:$0xff] }
   0xe   :  { %433 = vmatprep.subr.bf16.mxu0 %v432_v14  ;;  %453 = vmatprep.subr.bf16.mxu1 %v432_v14  ;;  %v26_v44 = vld [vmem:[%s686_s1 + $0x60] sm:$0xff]  ;;  %v27_v47 = vld [vmem:[%s686_s1 + $0x68] sm:$0x3f]  ;;  %v21_v49 = vld [vmem:[%s686_s1 + $0x38] sm:$0xff] }
   0xf   :  { %v54_v45 = vld [vmem:[%s687_s2 + $0x60] sm:$0xff] }
  0x10   :  { %83 = vperm.xlu1 %467, %v47_v24   ;;  %78 = vperm.xlu0 %466, %v46_v25  }
  0x11   :  { %435 = vmatpush3.bf16.msra.mxu0 %v432_v14  ;;  %460 = vmatpush3.bf16.msra.mxu1 %v432_v14 }
  0x12   :  { %437 = vmatprep.subr.bf16.mxu0 %v436_v21  ;;  %454 = vmatprep.subr.bf16.mxu1 %v436_v21 }
  0x14   :  { %93 = vperm.xlu1 %467, %v49_v29   ;;  %88 = vperm.xlu0 %466, %v48_v30  }
  0x15   :  { %439 = vmatpush3.bf16.msra.mxu0 %v436_v21  ;;  %461 = vmatpush3.bf16.msra.mxu1 %v436_v21 }
  0x16   :  { %441 = vmatprep.subr.bf16.mxu0 %v440_v26  ;;  %455 = vmatprep.subr.bf16.mxu1 %v440_v26 }
  0x18   :  { %103 = vperm.xlu1 %467, %v51_v32   ;;  %98 = vperm.xlu0 %466, %v50_v33  }
  0x19   :  { %443 = vmatpush3.bf16.msra.mxu0 %v440_v26  ;;  %462 = vmatpush3.bf16.msra.mxu1 %v440_v26 }
  0x1a   :  { %446 = vmatprep.subr.msk.bf16.mxu0 %vm445_vm3, %v444_v31  ;;  %456 = vmatprep.subr.msk.bf16.mxu1 %vm445_vm3, %v444_v31 }
  0x1c   :  { %113 = vperm.xlu1 %467, %v53_v34   ;;  %108 = vperm.xlu0 %466, %v52_v39  }
  0x1d   :  { %449 = vmatpush3.bf16.msk.msra.mxu0 %vm445_vm3, %v444_v31  ;;  %463 = vmatpush3.bf16.msk.msra.mxu1 %vm445_vm3, %v444_v31 }
  0x20   :  { %400 = vmatmul.mubr.msk.f32.vlgmr.msra.gmra.mrb[0].mxu0 %vm126_vm0, %v15_v35  ;;  %412 = vmatmul.mubr.msk.f32.vlgmr.msra.gmra.mrb[0].mxu1 %vm126_vm0, %v23_v36 }
  0x21   :  { %402 = vmatprep.mubr.msk.f32.mxu0 %vm126_vm0, %v16_v37  ;;  %414 = vmatprep.mubr.msk.f32.mxu1 %vm126_vm0, %v24_v38 }
  0x22   :  { %123 = vperm.xlu1 %467, %v55_v40   ;;  %118 = vperm.xlu0 %466, %v54_v45  }
  0x24   :  { %403 = vmatmul.mubr.msk.f32.gmra.mrb[2].mxu0 %vm126_vm0, %v17_v41  ;;  %415 = vmatmul.mubr.msk.f32.gmra.mrb[2].mxu1 %vm126_vm0, %v25_v42 }
  0x25   :  { %405 = vmatprep.mubr.msk.f32.mxu0 %vm126_vm0, %v18_v43  ;;  %417 = vmatprep.mubr.msk.f32.mxu1 %vm126_vm0, %v26_v44 }
  0x28   :  { %406 = vmatmul.mubr.msk.f32.gmra.mrb[4].mxu0 %vm126_vm0, %v19_v46  ;;  %418 = vmatmul.mubr.msk.f32.gmra.mrb[4].mxu1 %vm126_vm0, %v27_v47 }
  0x29   :  { %408 = vmatprep.mubr.msk.f32.mxu0 %vm126_vm0, %v20_v48 }
  0x2c   :  { %409 = vmatmul.mubr.msk.f32.gmra.mrb[6].mxu0 %vm126_vm0, %v21_v49 }
  0x87   :  { %v69_v50 = vpop.permute.xlu1 %68  ;;  %v59_v51 = vpop.permute.xlu0 %58 }
  0x8b   :  { %v74_v52 = vpop.permute.xlu1 %73  ;;  %v64_v53 = vpop.permute.xlu0 %63 }
  0x8f   :  { %v84_v54 = vpop.permute.xlu1 %83  ;;  %v79_v55 = vpop.permute.xlu0 %78 }
  0x93   :  { %v94_v56 = vpop.permute.xlu1 %93  ;;  %v89_v57 = vpop.permute.xlu0 %88 }
  0x97   :  { %v104_v58 = vpop.permute.xlu1 %103  ;;  %v99_v59 = vpop.permute.xlu0 %98 }
  0x9b   :  { %v114_v60 = vpop.permute.xlu1 %113  ;;  %v109_v61 = vpop.permute.xlu0 %108 }
  0xa1   :  { %v124_v14 = vpop.permute.xlu1 %123  ;;  %v119_v15 = vpop.permute.xlu0 %118 }
  0xf3   :  { %v401_v62 = vpop.f32.mrb[0].mxu0  ;;  %v413_v63 = vpop.f32.mrb[0].mxu1 }
  0xf4   :  { %v245_v0 = vadd.f32 %v401_v62, %v64_v53  ;;  %v285_v1 = vadd.f32 %v413_v63, %v104_v58  ;;  %v239_v2 = vpop.f32.mrb[1].mxu0  ;;  %v279_v3 = vpop.f32.mrb[1].mxu1 }
  0xf5   :  { %v240_v4 = vadd.f32 %v239_v2, %v59_v51  ;;  %v280_v5 = vadd.f32 %v279_v3, %v99_v59 }
  0xf6   :  { %310 = vst.msk [vmem:[%s688_s3 + $0x8] sm:$0xff] %vm308_vm4, %v245_v0  ;;  %318 = vst.msk [vmem:[%s688_s3 + $0x48] sm:$0xff] %vm308_vm4, %v285_v1 }
  0xf7   :  { %309 = vst.msk [vmem:[%s688_s3] sm:$0xff] %vm308_vm4, %v240_v4  ;;  %317 = vst.msk [vmem:[%s688_s3 + $0x40] sm:$0xff] %vm308_vm4, %v280_v5  ;;  %v404_v6 = vpop.f32.mrb[2].mxu0  ;;  %v416_v7 = vpop.f32.mrb[2].mxu1 }
  0xf8   :  { %v255_v8 = vadd.f32 %v404_v6, %v74_v52  ;;  %v295_v9 = vadd.f32 %v416_v7, %v114_v60  ;;  %v249_v10 = vpop.f32.mrb[3].mxu0  ;;  %v289_v11 = vpop.f32.mrb[3].mxu1 }
  0xf9   :  { %v250_v12 = vadd.f32 %v249_v10, %v69_v50  ;;  %v290_v13 = vadd.f32 %v289_v11, %v109_v61 }
  0xfa   :  { %312 = vst.msk [vmem:[%s688_s3 + $0x18] sm:$0xff] %vm308_vm4, %v255_v8  ;;  %320 = vst.msk [vmem:[%s688_s3 + $0x58] sm:$0xff] %vm308_vm4, %v295_v9 }
  0xfb   :  { %311 = vst.msk [vmem:[%s688_s3 + $0x10] sm:$0xff] %vm308_vm4, %v250_v12  ;;  %319 = vst.msk [vmem:[%s688_s3 + $0x50] sm:$0xff] %vm308_vm4, %v290_v13  ;;  %v407_v16 = vpop.f32.mrb[4].mxu0  ;;  %v419_v17 = vpop.f32.mrb[4].mxu1 }
  0xfc   :  { %v265_v18 = vadd.f32 %v407_v16, %v84_v54  ;;  %v305_v19 = vadd.f32 %v419_v17, %v124_v14  ;;  %v259_v20 = vpop.f32.mrb[5].mxu0  ;;  %v299_v21 = vpop.f32.mrb[5].mxu1 }
  0xfd   :  { %v260_v22 = vadd.f32 %v259_v20, %v79_v55  ;;  %v300_v23 = vadd.f32 %v299_v21, %v119_v15 }
  0xfe   :  { %314 = vst.msk [vmem:[%s688_s3 + $0x28] sm:$0xff] %vm308_vm4, %v265_v18 }
  0xff   :  { %323 = vst.msk [vmem:[%s688_s3 + $0x68] sm:$0x3f] %vm322_vm5, %v305_v19  ;;  %v410_v24 = vpop.f32.mrb[6].mxu0 }
 0x100   :  { %313 = vst.msk [vmem:[%s688_s3 + $0x20] sm:$0xff] %vm308_vm4, %v260_v22  ;;  %321 = vst.msk [vmem:[%s688_s3 + $0x60] sm:$0xff] %vm308_vm4, %v300_v23  ;;  %v275_v25 = vadd.f32 %v410_v24, %v94_v56  ;;  %v269_v26 = vpop.f32.mrb[7].mxu0 }
 0x101   :  { %v270_v27 = vadd.f32 %v269_v26, %v89_v57 }
 0x102   :  { %316 = vst.msk [vmem:[%s688_s3 + $0x38] sm:$0xff] %vm308_vm4, %v275_v25 }
 0x103   :  { %315 = vst.msk [vmem:[%s688_s3 + $0x30] sm:$0xff] %vm308_vm4, %v270_v27 }

</bundles_post_ra>
